<compile_context>
chip_gen: v7x
topology: tpu7x:2x2x1
jax: 0.10.0
libtpu: 0.0.40
codegen_flags: <defaults>
</compile_context>

<pallas_src>
import jax
import jax.numpy as jnp
from jax.experimental import pallas as pl
from jax.experimental.pallas import tpu as pltpu


def critic_kernel(sa_ref, ws_ref, bs_ref, w1h_ref, w1a_ref, b1_ref,
                  w2_ref, b2_ref, out_ref):
    # sa_ref: (TB, S+A) packed [states | actions] tile (f32 or bf16).
    sa = sa_ref[...]

    # ---- layer 1: states -> hidden, ReLU ----
    # ws is zero in the action rows, so sa @ ws == s @ W_states.
    h = jnp.dot(sa, ws_ref[...], preferred_element_type=jnp.float32) + bs_ref[...]
    h = jnp.maximum(h, 0.0)

    # ---- layer 2: cat([h, a]) -> hidden, ReLU (split-weight formulation) ----
    # w1a is zero in the state rows, so sa @ w1a == a @ W1_actions.
    x = (jnp.dot(h.astype(w1h_ref.dtype), w1h_ref[...],
                 preferred_element_type=jnp.float32)
         + jnp.dot(sa, w1a_ref[...], preferred_element_type=jnp.float32)
         + b1_ref[...])
    x = jnp.maximum(x, 0.0)

    # ---- layer 3: hidden -> 1 as a VPU multiply + lane reduction ----
    # w2_ref is (1, H); avoids a 1-column MXU matmul (worst-shaped op).
    q = jnp.sum(x * w2_ref[...], axis=-1, keepdims=True) + b2_ref[...]
    out_ref[...] = q.astype(out_ref.dtype)


def make_params(key, n_states, n_actions, n_hidden):
    """Parameters in (in, out) layout, matching nn.Linear init of the module."""
    ks = jax.random.split(key, 6)

    def xavier(k, fan_in, fan_out):
        # nn.init.xavier_uniform_ (gain=1): U(-a, a), a = sqrt(6/(fan_in+fan_out))
        lim = jnp.sqrt(6.0 / (fan_in + fan_out))
        return jax.random.uniform(k, (fan_in, fan_out), jnp.float32, -lim, lim)

    def bias(k, fan_in, n_out):
        # PyTorch nn.Linear default bias init: U(-1/sqrt(fan_in), 1/sqrt(fan_in))
        lim = 1.0 / jnp.sqrt(jnp.asarray(fan_in, jnp.float32))
        return jax.random.uniform(k, (1, n_out), jnp.float32, -lim, lim)

    return dict(
        ws=xavier(ks[0], n_states, n_hidden),
        bs=bias(ks[1], n_states, n_hidden),
        w1=xavier(ks[2], n_hidden + n_actions, n_hidden),
        b1=bias(ks[3], n_hidden + n_actions, n_hidden),
        w2=xavier(ks[4], n_hidden, 1),
        b2=bias(ks[5], n_hidden, 1),
        n_states=n_states, n_actions=n_actions, n_hidden=n_hidden,
    )


def _pack_params(p, compute_dtype):
    """Repack weights for the packed-[s|a] kernel layout (exactly equivalent)."""
    S, A, H = p["n_states"], p["n_actions"], p["n_hidden"]
    F = S + A
    ws_pad = jnp.zeros((F, H), jnp.float32).at[:S].set(p["ws"])     # action rows = 0
    w1h = p["w1"][:H]                                               # hidden rows
    w1a_pad = jnp.zeros((F, H), jnp.float32).at[S:].set(p["w1"][H:])  # state rows = 0
    w2_row = p["w2"].T                                              # (1, H) lane vector
    return (ws_pad.astype(compute_dtype), p["bs"],
            w1h.astype(compute_dtype), w1a_pad.astype(compute_dtype), p["b1"],
            w2_row, p["b2"])


def critic_forward(s, a, params, *, block_b=512, compute_dtype=jnp.float32):
    B = s.shape[0]
    S, A, H = params["n_states"], params["n_actions"], params["n_hidden"]
    F = S + A
    ws, bs, w1h, w1a, b1, w2, b2 = _pack_params(params, compute_dtype)

    # Pack [s | a] once on the host side: one lane-padded activation slab
    # instead of two, one DMA stream per tile instead of two.
    sa = jnp.concatenate([s, a], axis=1).astype(compute_dtype)

    # Batch tile: full B for small batches, otherwise a multiple of 8 (sublane).
    tb = B if B <= block_b else block_b
    if tb != B and tb % 8 != 0:
        tb = max(8, (tb // 8) * 8)
    n_tiles = -(-B // tb)
    Bp = n_tiles * tb
    if Bp != B:
        sa = jnp.pad(sa, ((0, Bp - B), (0, 0)))

    itemsize = jnp.dtype(compute_dtype).itemsize
    flops = 2 * Bp * (F * H + H * H + F * H + H)
    bytes_accessed = (Bp * F * itemsize                          # activations in
                      + (2 * F * H + H * H) * itemsize           # weights
                      + (3 * H + 1) * 4                          # biases + w2 row
                      + Bp * 4)                                  # q out

    data_map = lambda i: (i, 0)      # tiled along batch
    resident_map = lambda i: (0, 0)  # weights stay VMEM-resident across steps

    out = pl.pallas_call(
        critic_kernel,
        out_shape=jax.ShapeDtypeStruct((Bp, 1), jnp.float32),
        grid=(n_tiles,),
        in_specs=[
            pl.BlockSpec((tb, F), data_map),       # packed [s|a]
            pl.BlockSpec((F, H), resident_map),    # ws (zero-padded)
            pl.BlockSpec((1, H), resident_map),    # bs
            pl.BlockSpec((H, H), resident_map),    # w1h
            pl.BlockSpec((F, H), resident_map),    # w1a (zero-padded)
            pl.BlockSpec((1, H), resident_map),    # b1
            pl.BlockSpec((1, H), resident_map),    # w2 lane vector
            pl.BlockSpec((1, 1), resident_map),    # b2
        ],
        out_specs=pl.BlockSpec((tb, 1), data_map),
        compiler_params=pltpu.CompilerParams(
            dimension_semantics=("parallel",),     # megacore sharding on v7x
        ),
        cost_estimate=pl.CostEstimate(
            flops=int(flops), transcendentals=0,
            bytes_accessed=int(bytes_accessed)),
    )(sa, ws, bs, w1h, w1a, b1, w2, b2)
    return out[:B]


def critic_reference(s, a, p):
    h = jnp.maximum(s @ p["ws"] + p["bs"], 0.0)
    x = jnp.concatenate([h, a], axis=1)
    x = jnp.maximum(x @ p["w1"] + p["b1"], 0.0)
    return x @ p["w2"] + p["b2"]


if __name__ == "__main__":
    # Small shapes consistent with the module: batch=8, n_states=16, n_actions=4, n_hidden=32
    B, n_states, n_actions, n_hidden = 8, 16, 4, 32

    key = jax.random.PRNGKey(0)
    k_s, k_a, k_p = jax.random.split(key, 3)
    s = jax.random.normal(k_s, (B, n_states), jnp.float32)
    a = jax.random.normal(k_a, (B, n_actions), jnp.float32)
    params = make_params(k_p, n_states, n_actions, n_hidden)

    # f32 path, single tile (grid=(1,)), exact check against the reference.
    q = jax.block_until_ready(critic_forward(s, a, params))
    q_ref = critic_reference(s, a, params)
    assert q.shape == (B, 1)
    assert jnp.allclose(q, q_ref, atol=1e-5, rtol=1e-5)

    # Larger batch exercising the tiled/pipelined grid and the bf16 compute path
    # (f32 MXU accumulation, f32 bias/ReLU/reduction).
    B2 = 1024
    k_s2, k_a2 = jax.random.split(jax.random.PRNGKey(1))
    s2 = jax.random.normal(k_s2, (B2, n_states), jnp.float32)
    a2 = jax.random.normal(k_a2, (B2, n_actions), jnp.float32)
    q2 = jax.block_until_ready(
        critic_forward(s2, a2, params, block_b=512, compute_dtype=jnp.bfloat16))
    q2_ref = critic_reference(s2, a2, params)
    assert q2.shape == (B2, 1)
    rel_err = jnp.max(jnp.abs(q2 - q2_ref)) / (jnp.max(jnp.abs(q2_ref)) + 1e-6)
    assert rel_err < 1e-1, rel_err

    print("KERNEL_OK")
</pallas_src>

<mosaic_0001>
module attributes {stable_mosaic.version = 11 : i64} {
  func.func @critic_kernel(%arg0: i32, %arg1: memref<8x20xf32, #tpu.memory_space<vmem>>, %arg2: memref<20x32xf32, #tpu.memory_space<vmem>>, %arg3: memref<1x32xf32, #tpu.memory_space<vmem>>, %arg4: memref<32x32xf32, #tpu.memory_space<vmem>>, %arg5: memref<20x32xf32, #tpu.memory_space<vmem>>, %arg6: memref<1x32xf32, #tpu.memory_space<vmem>>, %arg7: memref<1x32xf32, #tpu.memory_space<vmem>>, %arg8: memref<1x1xf32, #tpu.memory_space<vmem>>, %arg9: memref<8x1xf32, #tpu.memory_space<vmem>>) attributes {dimension_semantics = [#tpu.dimension_semantics<parallel>], iteration_bounds = array<i64: 1>, scalar_prefetch = 0 : i64, scratch_operands = 0 : i64, tpu.core_type = #tpu.core_type<tc>, window_params = [{transform_indices = @transform_0, window_bounds = array<i64: 8, 20>}, {pipeline_mode = #tpu.pipeline_mode<synchronous>, transform_indices = @transform_1, window_bounds = array<i64: 20, 32>}, {pipeline_mode = #tpu.pipeline_mode<synchronous>, transform_indices = @transform_2, window_bounds = array<i64: 1, 32>}, {pipeline_mode = #tpu.pipeline_mode<synchronous>, transform_indices = @transform_3, window_bounds = array<i64: 32, 32>}, {pipeline_mode = #tpu.pipeline_mode<synchronous>, transform_indices = @transform_4, window_bounds = array<i64: 20, 32>}, {pipeline_mode = #tpu.pipeline_mode<synchronous>, transform_indices = @transform_5, window_bounds = array<i64: 1, 32>}, {pipeline_mode = #tpu.pipeline_mode<synchronous>, transform_indices = @transform_6, window_bounds = array<i64: 1, 32>}, {pipeline_mode = #tpu.pipeline_mode<synchronous>, transform_indices = @transform_7, window_bounds = array<i64: 1, 1>}, {transform_indices = @transform_8, window_bounds = array<i64: 8, 1>}]} {
    %c0 = arith.constant 0 : index
    %c0_0 = arith.constant 0 : index
    %0 = vector.load %arg1[%c0, %c0_0] : memref<8x20xf32, #tpu.memory_space<vmem>>, vector<8x20xf32>
    %c0_1 = arith.constant 0 : index
    %c0_2 = arith.constant 0 : index
    %1 = vector.load %arg2[%c0_1, %c0_2] : memref<20x32xf32, #tpu.memory_space<vmem>>, vector<20x32xf32>
    %cst = arith.constant dense<0.000000e+00> : vector<8x32xf32>
    %2 = tpu.matmul %0, %1, %cst {dimension_numbers = #tpu.dot_dimension_numbers<[1], [0], [0], [1], [0, 0, 1, 1], [], []>} : vector<8x20xf32>, vector<20x32xf32>, vector<8x32xf32> -> vector<8x32xf32>
    %c0_3 = arith.constant 0 : index
    %c0_4 = arith.constant 0 : index
    %3 = vector.load %arg3[%c0_3, %c0_4] : memref<1x32xf32, #tpu.memory_space<vmem>>, vector<1x32xf32>
    %4 = vector.broadcast %3 : vector<1x32xf32> to vector<8x32xf32>
    %5 = arith.addf %2, %4 : vector<8x32xf32>
    %cst_5 = arith.constant 0.000000e+00 : f32
    %6 = vector.broadcast %cst_5 : f32 to vector<8x32xf32>
    %7 = arith.maximumf %5, %6 : vector<8x32xf32>
    %c0_6 = arith.constant 0 : index
    %c0_7 = arith.constant 0 : index
    %8 = vector.load %arg4[%c0_6, %c0_7] : memref<32x32xf32, #tpu.memory_space<vmem>>, vector<32x32xf32>
    %cst_8 = arith.constant dense<0.000000e+00> : vector<8x32xf32>
    %9 = tpu.matmul %7, %8, %cst_8 {dimension_numbers = #tpu.dot_dimension_numbers<[1], [0], [0], [1], [0, 0, 1, 1], [], []>} : vector<8x32xf32>, vector<32x32xf32>, vector<8x32xf32> -> vector<8x32xf32>
    %c0_9 = arith.constant 0 : index
    %c0_10 = arith.constant 0 : index
    %10 = vector.load %arg5[%c0_9, %c0_10] : memref<20x32xf32, #tpu.memory_space<vmem>>, vector<20x32xf32>
    %cst_11 = arith.constant dense<0.000000e+00> : vector<8x32xf32>
    %11 = tpu.matmul %0, %10, %cst_11 {dimension_numbers = #tpu.dot_dimension_numbers<[1], [0], [0], [1], [0, 0, 1, 1], [], []>} : vector<8x20xf32>, vector<20x32xf32>, vector<8x32xf32> -> vector<8x32xf32>
    %12 = arith.addf %9, %11 : vector<8x32xf32>
    %c0_12 = arith.constant 0 : index
    %c0_13 = arith.constant 0 : index
    %13 = vector.load %arg6[%c0_12, %c0_13] : memref<1x32xf32, #tpu.memory_space<vmem>>, vector<1x32xf32>
    %14 = vector.broadcast %13 : vector<1x32xf32> to vector<8x32xf32>
    %15 = arith.addf %12, %14 : vector<8x32xf32>
    %cst_14 = arith.constant 0.000000e+00 : f32
    %16 = vector.broadcast %cst_14 : f32 to vector<8x32xf32>
    %17 = arith.maximumf %15, %16 : vector<8x32xf32>
    %c0_15 = arith.constant 0 : index
    %c0_16 = arith.constant 0 : index
    %18 = vector.load %arg7[%c0_15, %c0_16] : memref<1x32xf32, #tpu.memory_space<vmem>>, vector<1x32xf32>
    %19 = vector.broadcast %18 : vector<1x32xf32> to vector<8x32xf32>
    %20 = arith.mulf %17, %19 : vector<8x32xf32>
    %cst_17 = arith.constant dense<0.000000e+00> : vector<8xf32>
    %21 = vector.multi_reduction <add>, %20, %cst_17 [1] : vector<8x32xf32> to vector<8xf32>
    %22 = vector.shape_cast %21 : vector<8xf32> to vector<8x1xf32>
    %c0_18 = arith.constant 0 : index
    %c0_19 = arith.constant 0 : index
    %23 = vector.load %arg8[%c0_18, %c0_19] : memref<1x1xf32, #tpu.memory_space<vmem>>, vector<1x1xf32>
    %24 = vector.broadcast %23 : vector<1x1xf32> to vector<8x1xf32>
    %25 = arith.addf %22, %24 : vector<8x1xf32>
    %c0_20 = arith.constant 0 : index
    %c0_21 = arith.constant 0 : index
    %26 = vector.load %arg9[%c0_20, %c0_21] : memref<8x1xf32, #tpu.memory_space<vmem>>, vector<8x1xf32>
    tpu.vector_store %arg9[%c0_20, %c0_21], %25 {strides = array<i32>} : memref<8x1xf32, #tpu.memory_space<vmem>>, vector<8x1xf32>,
    return
  }
  func.func @transform_0(%arg0: i32) -> (i32, i32) {
    %c0_i32 = arith.constant 0 : i32
    %c0_i32_0 = arith.constant 0 : i32
    return %arg0, %c0_i32 : i32, i32
  }
  func.func @transform_1(%arg0: i32) -> (i32, i32) {
    %c0_i32 = arith.constant 0 : i32
    %c0_i32_0 = arith.constant 0 : i32
    %c0_i32_1 = arith.constant 0 : i32
    return %c0_i32, %c0_i32_0 : i32, i32
  }
  func.func @transform_2(%arg0: i32) -> (i32, i32) {
    %c0_i32 = arith.constant 0 : i32
    %c0_i32_0 = arith.constant 0 : i32
    %c0_i32_1 = arith.constant 0 : i32
    return %c0_i32, %c0_i32_0 : i32, i32
  }
  func.func @transform_3(%arg0: i32) -> (i32, i32) {
    %c0_i32 = arith.constant 0 : i32
    %c0_i32_0 = arith.constant 0 : i32
    %c0_i32_1 = arith.constant 0 : i32
    return %c0_i32, %c0_i32_0 : i32, i32
  }
  func.func @transform_4(%arg0: i32) -> (i32, i32) {
    %c0_i32 = arith.constant 0 : i32
    %c0_i32_0 = arith.constant 0 : i32
    %c0_i32_1 = arith.constant 0 : i32
    return %c0_i32, %c0_i32_0 : i32, i32
  }
  func.func @transform_5(%arg0: i32) -> (i32, i32) {
    %c0_i32 = arith.constant 0 : i32
    %c0_i32_0 = arith.constant 0 : i32
    %c0_i32_1 = arith.constant 0 : i32
    return %c0_i32, %c0_i32_0 : i32, i32
  }
  func.func @transform_6(%arg0: i32) -> (i32, i32) {
    %c0_i32 = arith.constant 0 : i32
    %c0_i32_0 = arith.constant 0 : i32
    %c0_i32_1 = arith.constant 0 : i32
    return %c0_i32, %c0_i32_0 : i32, i32
  }
  func.func @transform_7(%arg0: i32) -> (i32, i32) {
    %c0_i32 = arith.constant 0 : i32
    %c0_i32_0 = arith.constant 0 : i32
    %c0_i32_1 = arith.constant 0 : i32
    return %c0_i32, %c0_i32_0 : i32, i32
  }
  func.func @transform_8(%arg0: i32) -> (i32, i32) {
    %c0_i32 = arith.constant 0 : i32
    %c0_i32_0 = arith.constant 0 : i32
    return %arg0, %c0_i32 : i32, i32
  }
}

</mosaic_0001>

<bundles_post_ra>
// kernel: tpu_custom_call.1
= control target key start
LH: loop header
LB: loop body
LE: loop exit
PB: predicated region body
PF: predicated region fallthrough
CT: control target
= control target key end

     0   :  { %s662_s0 = inlined_call_operand.hbm [shape: f32[8,20], index: 0, kind: input, shape index: {}]   ;;  %s663_s1 = inlined_call_operand.hbm [shape: f32[20,32], index: 1, kind: input, shape index: {}]   ;;  %s664_s2 = inlined_call_operand.vmem [shape: f32[1,32], index: 2, kind: input, shape index: {}]   ;;  %s665_s3 = inlined_call_operand.hbm [shape: f32[32,32], index: 3, kind: input, shape index: {}]   ;;  %s666_s4 = inlined_call_operand.hbm [shape: f32[20,32], index: 4, kind: input, shape index: {}]   ;;  %s667_s5 = inlined_call_operand.vmem [shape: f32[1,32], index: 5, kind: input, shape index: {}]   ;;  %s668_s6 = inlined_call_operand.vmem [shape: f32[1,32], index: 6, kind: input, shape index: {}]   ;;  %s669_s7 = inlined_call_operand.<no memory space> [shape: f32[1,1], index: 7, kind: input, shape index: {}]   ;;  %s670_s8 = inlined_call_operand.vmem [shape: f32[8,1], index: 8, kind: output, shape index: {}]  }
   0x1   :  { %v13_v0 = vstv %s669_s7 }
   0x2   :  { %14 = vst [vmem:[#allocation2] sm:$0x1] %v13_v0 }
   0x3   :  { %15 = vsyncpa [#allocation4], 0 }
   0x4   :  { %16 = vsyncpa [#allocation6], 0 }
   0x5   :  { %17 = vsyncpa [#allocation9], 0  ;;  %s531_s29 = smov [#allocation5]   ;;  %s437_s11 = scalar_lea.hbm %s663_s1, 384 }
   0x6   :  { %s33_s30 = sshll.u32 %s531_s29, 4  ;;  %p438_p0 = scmp.ne.s32.totalorder %s663_s1, %s437_s11  ;;  %s34_s30 = int_to_ptr.vmem [resolvable:$true] %s33_s30 }
   0x7   :  { %p441_p1 = scmp.lt.u32.totalorder %s437_s11, %s663_s1 }
   0x9   :  { %p443_p2 = pnand %p441_p1, %p438_p0 }
   0xb   :  { %446 = shalt.err (!%p443_p2)
}
   0xc   :  { %s447_s7 = scalar_lea.vmem %s34_s30, 384  ;;  %p452_p4 = scmp.lt.s32.totalorder %s34_s30, %s34_s30 }
   0xd   :  { %p448_p3 = scmp.ne.s32.totalorder %s34_s30, %s447_s7  ;;  %p453_p5 = scmp.lt.s32.totalorder %s447_s7, %s447_s7 }
   0xf   :  { %p454_p6 = por %p453_p5, %p452_p4 }
  0x11   :  { %p455_p7 = pnand %p454_p6, %p448_p3 }
  0x13   :  { %458 = shalt.err (!%p455_p7)
}
  0x14   :  { %s532_s16 = smov 128   ;;  %s533_s17 = smov 8  }
  0x15   :  { %39 = dma.hbm_to_vmem [thread:$0]  %s663_s1, 384, %s34_s30, [#allocation6], %s532_s16, %s532_s16, %s533_s17  }
  0x16   :  { %s534_s20 = smov [#allocation3]   ;;  %s535_s22 = smov [#allocation7]  }
  0x17   :  { %s24_s21 = sshll.u32 %s534_s20, 4  ;;  %s47_s23 = sshll.u32 %s535_s22, 4  ;;  %s25_s21 = int_to_ptr.vmem [resolvable:$true] %s24_s21  ;;  %s48_s23 = int_to_ptr.vmem [resolvable:$true] %s47_s23 }
  0x18   :  { %s459_s26 = scalar_lea.hbm %s662_s0, 128 }
  0x19   :  { %p460_p8 = scmp.ne.s32.totalorder %s662_s0, %s459_s26  ;;  %p463_p9 = scmp.lt.u32.totalorder %s459_s26, %s662_s0 }
  0x1b   :  { %p465_p10 = pnand %p463_p9, %p460_p8 }
  0x1d   :  { %468 = shalt.err (!%p465_p10)
}
  0x1e   :  { %s469_s1 = scalar_lea.vmem %s25_s21, 128  ;;  %p474_p12 = scmp.lt.s32.totalorder %s25_s21, %s25_s21 }
  0x1f   :  { %p470_p11 = scmp.ne.s32.totalorder %s25_s21, %s469_s1  ;;  %p475_p13 = scmp.lt.s32.totalorder %s469_s1, %s469_s1 }
  0x21   :  { %p476_p0 = por %p475_p13, %p474_p12 }
  0x23   :  { %p477_p1 = pnand %p476_p0, %p470_p11 }
  0x25   :  { %480 = shalt.err (!%p477_p1)
}
  0x26   :  { %27 = dma.hbm_to_vmem [thread:$0]  %s662_s0, 128, %s25_s21, [#allocation4]  }
  0x27   :  { %s481_s13 = scalar_lea.hbm %s665_s3, 512 }
  0x28   :  { %p482_p2 = scmp.ne.s32.totalorder %s665_s3, %s481_s13  ;;  %p485_p3 = scmp.lt.u32.totalorder %s481_s13, %s665_s3 }
  0x2a   :  { %p487_p4 = pnand %p485_p3, %p482_p2 }
  0x2c   :  { %490 = shalt.err (!%p487_p4)
}
  0x2d   :  { %s491_s19 = scalar_lea.vmem %s48_s23, 512  ;;  %p496_p6 = scmp.lt.s32.totalorder %s48_s23, %s48_s23 }
  0x2e   :  { %p492_p5 = scmp.ne.s32.totalorder %s48_s23, %s491_s19  ;;  %p497_p7 = scmp.lt.s32.totalorder %s491_s19, %s491_s19 }
  0x30   :  { %p498_p8 = por %p497_p7, %p496_p6 }
  0x32   :  { %p499_p9 = pnand %p498_p8, %p492_p5 }
  0x34   :  { %502 = shalt.err (!%p499_p9)
}
  0x35   :  { %53 = dma.hbm_to_vmem [thread:$0]  %s665_s3, 512, %s48_s23, [#allocation6], %s532_s16, %s532_s16, %s533_s17  }
  0x36   :  { %s536_s21 = smov [#allocation8]   ;;  %s503_s26 = scalar_lea.hbm %s666_s4, 384 }
  0x37   :  { %s59_s22 = sshll.u32 %s536_s21, 4  ;;  %p504_p10 = scmp.ne.s32.totalorder %s666_s4, %s503_s26  ;;  %s60_s22 = int_to_ptr.vmem [resolvable:$true] %s59_s22 }
  0x38   :  { %p507_p11 = scmp.lt.u32.totalorder %s503_s26, %s666_s4 }
  0x3a   :  { %p509_p12 = pnand %p507_p11, %p504_p10 }
  0x3c   :  { %512 = shalt.err (!%p509_p12)
}
  0x3d   :  { %s513_s1 = scalar_lea.vmem %s60_s22, 384  ;;  %p518_p0 = scmp.lt.s32.totalorder %s60_s22, %s60_s22 }
  0x3e   :  { %p514_p13 = scmp.ne.s32.totalorder %s60_s22, %s513_s1  ;;  %p519_p1 = scmp.lt.s32.totalorder %s513_s1, %s513_s1 }
  0x40   :  { %p520_p2 = por %p519_p1, %p518_p0 }
  0x42   :  { %p521_p3 = pnand %p520_p2, %p514_p13 }
  0x44   :  { %524 = shalt.err (!%p521_p3)
}
  0x45   :  { %65 = dma.hbm_to_vmem [thread:$0]  %s666_s4, 384, %s60_s22, [#allocation9], %s532_s16, %s532_s16, %s533_s17  }
  0x46   :  { %525 = dma.done.wait [#allocation4], 128  }
  0x47   :  { %526 = vsyncadd [#allocation4], 4294967168 }
  0x48   :  { %527 = dma.done.wait [#allocation6], 896  }
  0x49   :  { %528 = vsyncadd [#allocation6], 4294966400 }
  0x4a   :  { %529 = dma.done.wait [#allocation9], 384  }
  0x4b   :  { %530 = vsyncadd [#allocation9], 4294966912  ;;  %v537_v1 = vmov 0.0|0.0   ;;  %vm538_vm0 = vmmov 0   ;;  %v539_v2 = vmov 0.0   ;;  %v85_v3 = vld [vmem:[#allocation5] sm:$0xff] }
  0x4c   :  { %416 = vmatprep.subr.bf16.mxu1 %v537_v1  ;;  %393 = vmatprep.mubr.msk.f32.mxu1 %vm538_vm0, %v539_v2  ;;  %v86_v4 = vld [vmem:[#allocation5 + $0x8] sm:$0xff]  ;;  %v174_v6 = vld [vmem:[#allocation7] sm:$0xff]  ;;  %v175_v7 = vld [vmem:[#allocation7 + $0x8] sm:$0xff]  ;;  %vm99_vm1 = vcmask 1043456   ;;  %vm95_vm2 = vcmask 162816   ;;  %vm254_vm3 = vcmask 261120  }
  0x4d   :  { %422 = vmatprep.subr.bf16.mxu0 %v537_v1  ;;  %413 = vmatprep.mubr.msk.f32.mxu0 %vm538_vm0, %v539_v2  ;;  %v417_v5 = vpack.c.bf16 %v86_v4, %v85_v3  ;;  %v423_v8 = vpack.c.bf16 %v175_v7, %v174_v6  ;;  %v178_v9 = vld [vmem:[#allocation8] sm:$0xff]  ;;  %v179_v10 = vld [vmem:[#allocation8 + $0x8] sm:$0xff]  ;;  %v87_v11 = vld [vmem:[#allocation5 + $0x10] sm:$0xf]  ;;  %vm356_vm4 = vcmask 7168  }
  0x4e   :  { %v84_v12 = vld [vmem:[#allocation3] sm:$0xff]  ;;  %v420_v13 = vpack.c.bf16 %v179_v10, %v178_v9  ;;  %v176_v14 = vld [vmem:[#allocation7 + $0x10] sm:$0xff]  ;;  %v177_v15 = vld [vmem:[#allocation7 + $0x18] sm:$0xff] }
  0x4f   :  { %418 = vmatpush3.bf16.msra.mxu1 %v417_v5  ;;  %424 = vmatpush3.bf16.msra.mxu0 %v423_v8  ;;  %v426_v16 = vpack.c.bf16 %v177_v15, %v176_v14  ;;  %v180_v17 = vld [vmem:[#allocation8 + $0x10] sm:$0xf]  ;;  %v365_v18 = vld [vmem:[%s664_s2] ss:$0 sm:$0xff] }
  0x50   :  { %391 = vmatprep.subr.mxu1 %v539_v2  ;;  %425 = vmatprep.subr.bf16.mxu0 %v537_v1  ;;  %v371_v26 = vld [vmem:[%s667_s5] ss:$0 sm:$0xff] }
  0x51   :  { %v372_v30 = vld [vmem:[%s668_s6] ss:$0 sm:$0xff] }
  0x52   :  { %v373_v34 = vld [vmem:[#allocation2] ss:$0 sm:$0xff] }
  0x53   :  { %392 = vmatpush3.msk.msra.mxu1 %vm99_vm1, %v87_v11  ;;  %427 = vmatpush3.bf16.msra.mxu0 %v426_v16 }
  0x54   :  { %394 = vmatmul.mubr.msk.f32.vlgmr.msra.gmra.mrb[0].mxu1 %vm95_vm2, %v84_v12  ;;  %419 = vmatprep.subr.bf16.mxu1 %v537_v1 }
  0x55   :  { %421 = vmatpush3.bf16.msra.mxu1 %v420_v13  ;;  %402 = vmatprep.mubr.msk.f32.mxu1 %vm538_vm0, %v539_v2 }
  0x56   :  { %400 = vmatprep.subr.mxu1 %v539_v2 }
  0x59   :  { %401 = vmatpush3.msk.msra.mxu1 %vm99_vm1, %v180_v17 }
  0x5a   :  { %403 = vmatmul.mubr.msk.f32.vlgmr.msra.gmra.mrb[2].mxu1 %vm95_vm2, %v84_v12 }
 0x127   :  { %v169_v19 = vpop.f32.mrb[0].mxu1 }
 0x128   :  { %v170_v20 = vadd.f32 %v365_v18, %v169_v19  ;;  %v395_v21 = vpop.f32.mrb[1].mxu1 }
 0x12a   :  { %v173_v22 = vmax.f32 %v170_v20, 0.0 }
 0x12c   :  { %414 = vmatmul.mubr.msk.f32.vlgmr.msra.gmra.mrb[0].mxu0 %vm254_vm3, %v173_v22 }
 0x12d   :  { %v250_v23 = vpop.f32.mrb[2].mxu1 }
 0x12e   :  { %v404_v24 = vpop.f32.mrb[3].mxu1 }
 0x1ff   :  { %v324_v25 = vpop.f32.mrb[0].mxu0 }
 0x200   :  { %v325_v27 = vadd.f32 %v324_v25, %v250_v23  ;;  %v415_v28 = vpop.f32.mrb[1].mxu0 }
 0x202   :  { %v335_v29 = vadd.f32 %v371_v26, %v325_v27 }
 0x204   :  { %v336_v31 = vmax.f32 %v335_v29, 0.0 }
 0x206   :  { %v344_v32 = vmul.f32 %v372_v30, %v336_v31 }
 0x208   :  { %v345_v33 = vsel %vm254_vm3, %v344_v32, 0.0 }
 0x209   :  { %346 = vadd.xlane.f32.xlu0 %v345_v33 }
 0x296   :  { %v347_v35 = vpop.xlane.xlu0 %346 }
 0x297   :  { %v355_v36 = vadd.f32 %v373_v34, %v347_v35 }
 0x299   :  { %357 = vst.msk [vmem:[%s670_s8] sm:$0xff] %vm356_vm4, %v355_v36 }
 0x29a   :  { %362 = vsyncpa [#allocation4], 1 }
 0x29b   :  { %363 = vsyncpa [#allocation6], 1 }
 0x29c   :  { %364 = vsyncpa [#allocation9], 1 }

</bundles_post_ra>
